<compile_context>
chip_gen: v5e
topology: v5e:2x2
jax: 0.10.0
libtpu: 0.0.40
codegen_flags: <defaults>
</compile_context>

<pallas_src>
import functools
import math

import jax
import jax.numpy as jnp
from jax import lax
from jax.experimental import pallas as pl
from jax.experimental.pallas import tpu as pltpu


def _vmem_limit_bytes():
    cap = 64 * 1024 * 1024  # conservative fallback (v7x physical VMEM per TC)
    try:
        info = pltpu.get_tpu_info()
        cap = int(getattr(info, "vmem_capacity_bytes", cap))
    except Exception:
        pass
    # Leave headroom for compiler scratch: 3/4 of physical, capped at 96 MiB.
    return int(min(cap * 3 // 4, 96 * 1024 * 1024))


def _pick_tile(n, target, mult):
    """Largest multiple of `mult` <= target that evenly divides n, else n (full dim)."""
    if n <= target:
        return n
    if n % mult:
        return n
    t = (min(target, n) // mult) * mult
    while t >= mult:
        if n % t == 0:
            return t
        t -= mult
    return n


def _attn_heads_kernel(*refs, scale, has_mask):
    """Module-faithful path: all heads of one batch, one Lq tile, full Lk per step."""
    if has_mask:
        q_ref, k_ref, v_ref, mask_ref, res_ref, attn_ref = refs
    else:
        q_ref, k_ref, v_ref, res_ref, attn_ref = refs
        mask_ref = None

    q = q_ref[0]  # (H, bq, D)
    k = k_ref[0]  # (H, Lk, D)
    v = v_ref[0]  # (H, Lk, D)

    # Batched scores; contraction on last dim of both operands -> no k transpose.
    s = jnp.einsum("hqd,hkd->hqk", q, k,
                   preferred_element_type=jnp.float32) * scale

    if has_mask:
        m = mask_ref[0]  # (bq, Lk) int8, broadcast over heads
        s = jnp.where((m != 0)[None, :, :], -1000000000.0, s)

    s_max = jnp.max(s, axis=-1, keepdims=True)
    e = jnp.exp(s - s_max)
    p = e * pl.reciprocal(jnp.sum(e, axis=-1, keepdims=True), approx=True)

    attn_ref[0] = p.astype(attn_ref.dtype)
    res_ref[0] = jnp.einsum("hqk,hkd->hqd", p.astype(v.dtype), v,
                            preferred_element_type=jnp.float32).astype(res_ref.dtype)


def _flash_kernel(*refs, scale, has_mask):
    """Res-only path: online softmax over Lk tiles (flash style)."""
    if has_mask:
        q_ref, k_ref, v_ref, mask_ref, o_ref, m_sc, l_sc, acc_sc = refs
    else:
        q_ref, k_ref, v_ref, o_ref, m_sc, l_sc, acc_sc = refs
        mask_ref = None

    kj = pl.program_id(3)

    @pl.when(kj == 0)
    def _():
        m_sc[...] = jnp.full_like(m_sc, -jnp.inf)
        l_sc[...] = jnp.zeros_like(l_sc)
        acc_sc[...] = jnp.zeros_like(acc_sc)

    q = q_ref[0, 0]  # (bq, D)
    k = k_ref[0, 0]  # (bk, D)
    v = v_ref[0, 0]  # (bk, D)

    s = lax.dot_general(q, k, (((1,), (1,)), ((), ())),
                        preferred_element_type=jnp.float32) * scale  # (bq, bk)
    if has_mask:
        s = jnp.where(mask_ref[0] != 0, -1000000000.0, s)

    m_prev = m_sc[...]                                            # (bq, 1)
    m_new = jnp.maximum(m_prev, jnp.max(s, axis=-1, keepdims=True))
    alpha = jnp.exp(m_prev - m_new)
    p = jnp.exp(s - m_new)
    l_sc[...] = alpha * l_sc[...] + jnp.sum(p, axis=-1, keepdims=True)
    acc_sc[...] = alpha * acc_sc[...] + jnp.dot(
        p.astype(v.dtype), v, preferred_element_type=jnp.float32)
    m_sc[...] = m_new

    @pl.when(kj == pl.num_programs(3) - 1)
    def _():
        o_ref[0, 0] = (acc_sc[...] *
                       pl.reciprocal(l_sc[...], approx=True)).astype(o_ref.dtype)


def multiplicative_attention(q, k, v, mask=None, *, return_attn=True,
                             block_q=None, block_k=None, attn_dtype=None):
    """Forward pass of MultiplicativeAttention.

    q, k, v: [B, H, Lq/Lk, D] float.  mask: [B, Lq, Lk] (1 = masked out) or None.
    Returns (res, attn) if return_attn else (res, None).
    """
    B, H, Lq, D = q.shape
    Lk = k.shape[2]
    scale = 1.0 / math.sqrt(D)
    has_mask = mask is not None
    if has_mask:
        mask = mask.astype(jnp.int8)  # 4x less mask DMA than int32

    vmem_limit = _vmem_limit_bytes()

    if return_attn:
        bq = _pick_tile(Lq, block_q or 256, 8)
        in_specs = [
            pl.BlockSpec((1, H, bq, D), lambda b, i: (b, 0, i, 0)),
            pl.BlockSpec((1, H, Lk, D), lambda b, i: (b, 0, 0, 0)),
            pl.BlockSpec((1, H, Lk, D), lambda b, i: (b, 0, 0, 0)),
        ]
        args = [q, k, v]
        if has_mask:
            in_specs.append(pl.BlockSpec((1, bq, Lk), lambda b, i: (b, i, 0)))
            args.append(mask)
        kernel = functools.partial(_attn_heads_kernel, scale=scale, has_mask=has_mask)
        res, attn = pl.pallas_call(
            kernel,
            out_shape=(
                jax.ShapeDtypeStruct((B, H, Lq, D), q.dtype),
                jax.ShapeDtypeStruct((B, H, Lq, Lk), attn_dtype or q.dtype),
            ),
            grid=(B, Lq // bq),
            in_specs=in_specs,
            out_specs=[
                pl.BlockSpec((1, H, bq, D), lambda b, i: (b, 0, i, 0)),
                pl.BlockSpec((1, H, bq, Lk), lambda b, i: (b, 0, i, 0)),
            ],
            compiler_params=pltpu.CompilerParams(
                dimension_semantics=("parallel", "parallel"),
                vmem_limit_bytes=vmem_limit),
        )(*args)
        return res, attn

    # Res-only flash path: Lk tiled, online-softmax accumulator in VMEM scratch.
    bq = _pick_tile(Lq, block_q or 256, 8)
    bk = _pick_tile(Lk, block_k or 512, 128)
    in_specs = [
        pl.BlockSpec((1, 1, bq, D), lambda b, h, i, j: (b, h, i, 0)),
        pl.BlockSpec((1, 1, bk, D), lambda b, h, i, j: (b, h, j, 0)),
        pl.BlockSpec((1, 1, bk, D), lambda b, h, i, j: (b, h, j, 0)),
    ]
    args = [q, k, v]
    if has_mask:
        in_specs.append(pl.BlockSpec((1, bq, bk), lambda b, h, i, j: (b, i, j)))
        args.append(mask)
    kernel = functools.partial(_flash_kernel, scale=scale, has_mask=has_mask)
    res = pl.pallas_call(
        kernel,
        out_shape=jax.ShapeDtypeStruct((B, H, Lq, D), q.dtype),
        grid=(B, H, Lq // bq, Lk // bk),
        in_specs=in_specs,
        out_specs=pl.BlockSpec((1, 1, bq, D), lambda b, h, i, j: (b, h, i, 0)),
        scratch_shapes=[
            pltpu.VMEM((bq, 1), jnp.float32),   # running max
            pltpu.VMEM((bq, 1), jnp.float32),   # running denom
            pltpu.VMEM((bq, D), jnp.float32),   # output accumulator
        ],
        compiler_params=pltpu.CompilerParams(
            dimension_semantics=("parallel", "parallel", "parallel", "arbitrary"),
            vmem_limit_bytes=vmem_limit),
    )(*args)
    return res, None


def _reference(q, k, v, mask):
    d = q.shape[-1]
    s = jnp.einsum("bhqd,bhkd->bhqk", q, k) / math.sqrt(d)
    if mask is not None:
        s = jnp.where(mask[:, None, :, :] == 1, -1000000000.0, s)
    p = jax.nn.softmax(s, axis=-1)
    return jnp.einsum("bhqk,bhkd->bhqd", p, v), p


if __name__ == "__main__":
    # Small shapes implied by the module.
    B, H, Lq, Lk, D = 2, 2, 8, 8, 32
    kq, kk, kv = jax.random.split(jax.random.PRNGKey(0), 3)
    q = jax.random.normal(kq, (B, H, Lq, D), jnp.float32)
    k = jax.random.normal(kk, (B, H, Lk, D), jnp.float32)
    v = jax.random.normal(kv, (B, H, Lk, D), jnp.float32)
    mask = (jnp.arange(Lk)[None, :] > jnp.arange(Lq)[:, None]).astype(jnp.int32)
    mask = jnp.broadcast_to(mask, (B, Lq, Lk))

    res_ref, attn_ref = _reference(q, k, v, mask)

    # 1) module-faithful path (returns attention probabilities), with mask.
    res, attn = multiplicative_attention(q, k, v, mask)
    jax.block_until_ready((res, attn))
    assert jnp.allclose(res, res_ref, atol=2e-3, rtol=2e-3), "res mismatch (attn path)"
    assert jnp.allclose(attn, attn_ref, atol=2e-3, rtol=2e-3), "attn mismatch"

    # 2) no-mask variant (mask DMA / compare skipped entirely).
    res_nm, attn_nm = multiplicative_attention(q, k, v, None)
    res_nm_ref, attn_nm_ref = _reference(q, k, v, None)
    jax.block_until_ready((res_nm, attn_nm))
    assert jnp.allclose(res_nm, res_nm_ref, atol=2e-3, rtol=2e-3), "res mismatch (no mask)"
    assert jnp.allclose(attn_nm, attn_nm_ref, atol=2e-3, rtol=2e-3), "attn mismatch (no mask)"

    # 3) res-only flash path (online softmax), small shapes.
    res_f, _ = multiplicative_attention(q, k, v, mask, return_attn=False)
    jax.block_until_ready(res_f)
    assert jnp.allclose(res_f, res_ref, atol=2e-3, rtol=2e-3), "res mismatch (flash)"

    # 4) res-only flash path with the Lq/Lk tiling actually exercised.
    B2, H2, L2, D2 = 1, 2, 256, 64
    kq2, kk2, kv2 = jax.random.split(jax.random.PRNGKey(1), 3)
    q2 = jax.random.normal(kq2, (B2, H2, L2, D2), jnp.float32)
    k2 = jax.random.normal(kk2, (B2, H2, L2, D2), jnp.float32)
    v2 = jax.random.normal(kv2, (B2, H2, L2, D2), jnp.float32)
    mask2 = (jnp.arange(L2)[None, :] > jnp.arange(L2)[:, None]).astype(jnp.int32)
    mask2 = jnp.broadcast_to(mask2, (B2, L2, L2))
    res2_ref, _ = _reference(q2, k2, v2, mask2)
    res2, _ = multiplicative_attention(q2, k2, v2, mask2, return_attn=False,
                                       block_q=128, block_k=128)
    jax.block_until_ready(res2)
    assert jnp.allclose(res2, res2_ref, atol=2e-3, rtol=2e-3), "res mismatch (flash tiled)"

    print("KERNEL_OK")
</pallas_src>

<mosaic_0001>
module attributes {stable_mosaic.version = 11 : i64} {
  func.func @_attn_heads_kernel(%arg0: i32, %arg1: i32, %arg2: memref<1x2x8x32xf32, #tpu.memory_space<vmem>>, %arg3: memref<1x2x8x32xf32, #tpu.memory_space<vmem>>, %arg4: memref<1x2x8x32xf32, #tpu.memory_space<vmem>>, %arg5: memref<1x8x8xi8, #tpu.memory_space<vmem>>, %arg6: memref<1x2x8x32xf32, #tpu.memory_space<vmem>>, %arg7: memref<1x2x8x8xf32, #tpu.memory_space<vmem>>) attributes {dimension_semantics = [#tpu.dimension_semantics<parallel>, #tpu.dimension_semantics<parallel>], iteration_bounds = array<i64: 2, 1>, scalar_prefetch = 0 : i64, scratch_operands = 0 : i64, tpu.core_type = #tpu.core_type<tc>, window_params = [{transform_indices = @transform_0, window_bounds = array<i64: 1, 2, 8, 32>}, {transform_indices = @transform_1, window_bounds = array<i64: 1, 2, 8, 32>}, {transform_indices = @transform_2, window_bounds = array<i64: 1, 2, 8, 32>}, {transform_indices = @transform_3, window_bounds = array<i64: 1, 8, 8>}, {transform_indices = @transform_4, window_bounds = array<i64: 1, 2, 8, 32>}, {transform_indices = @transform_5, window_bounds = array<i64: 1, 2, 8, 8>}]} {
    %c0 = arith.constant 0 : index
    %c0_0 = arith.constant 0 : index
    %c0_1 = arith.constant 0 : index
    %c0_2 = arith.constant 0 : index
    %0 = vector.load %arg2[%c0, %c0_0, %c0_1, %c0_2] : memref<1x2x8x32xf32, #tpu.memory_space<vmem>>, vector<1x2x8x32xf32>
    %1 = vector.shape_cast %0 : vector<1x2x8x32xf32> to vector<2x8x32xf32>
    %c0_3 = arith.constant 0 : index
    %c0_4 = arith.constant 0 : index
    %c0_5 = arith.constant 0 : index
    %c0_6 = arith.constant 0 : index
    %2 = vector.load %arg3[%c0_3, %c0_4, %c0_5, %c0_6] : memref<1x2x8x32xf32, #tpu.memory_space<vmem>>, vector<1x2x8x32xf32>
    %3 = vector.shape_cast %2 : vector<1x2x8x32xf32> to vector<2x8x32xf32>
    %c0_7 = arith.constant 0 : index
    %c0_8 = arith.constant 0 : index
    %c0_9 = arith.constant 0 : index
    %c0_10 = arith.constant 0 : index
    %4 = vector.load %arg4[%c0_7, %c0_8, %c0_9, %c0_10] : memref<1x2x8x32xf32, #tpu.memory_space<vmem>>, vector<1x2x8x32xf32>
    %5 = vector.shape_cast %4 : vector<1x2x8x32xf32> to vector<2x8x32xf32>
    "tpu.trace_start"() <{level = 10 : i32, message = "hqd,hkd->hqk"}> : () -> ()
    %cst = arith.constant dense<0.000000e+00> : vector<2x8x8xf32>
    %6 = tpu.matmul %1, %3, %cst {dimension_numbers = #tpu.dot_dimension_numbers<[2], [2], [1], [1], [0, 0, 0, 1, 1, 1], [0], [0]>} : vector<2x8x32xf32>, vector<2x8x32xf32>, vector<2x8x8xf32> -> vector<2x8x8xf32>
    "tpu.trace_stop"() : () -> ()
    %cst_11 = arith.constant 0.176776692 : f32
    %7 = vector.broadcast %cst_11 : f32 to vector<2x8x8xf32>
    %8 = arith.mulf %6, %7 : vector<2x8x8xf32>
    %c0_12 = arith.constant 0 : index
    %c0_13 = arith.constant 0 : index
    %c0_14 = arith.constant 0 : index
    %9 = vector.load %arg5[%c0_12, %c0_13, %c0_14] : memref<1x8x8xi8, #tpu.memory_space<vmem>>, vector<1x8x8xi8>
    %10 = vector.shape_cast %9 : vector<1x8x8xi8> to vector<8x8xi8>
    %c0_i8 = arith.constant 0 : i8
    %11 = vector.broadcast %c0_i8 : i8 to vector<8x8xi8>
    %12 = arith.cmpi ne, %10, %11 : vector<8x8xi8>
    %13 = vector.shape_cast %12 : vector<8x8xi1> to vector<1x8x8xi1>
    %cst_15 = arith.constant -1.000000e+09 : f32
    %14 = vector.shape_cast %13 : vector<1x8x8xi1> to vector<1x8x8xi1>
    %15 = vector.broadcast %14 : vector<1x8x8xi1> to vector<2x8x8xi1>
    %16 = vector.broadcast %cst_15 : f32 to vector<2x8x8xf32>
    %17 = arith.select %15, %16, %8 : vector<2x8x8xi1>, vector<2x8x8xf32>
    %cst_16 = arith.constant dense<0xFF800000> : vector<2x8xf32>
    %18 = vector.multi_reduction <maximumf>, %17, %cst_16 [2] : vector<2x8x8xf32> to vector<2x8xf32>
    %19 = vector.shape_cast %18 : vector<2x8xf32> to vector<2x8x1xf32>
    %20 = vector.broadcast %19 : vector<2x8x1xf32> to vector<2x8x8xf32>
    %21 = arith.subf %17, %20 : vector<2x8x8xf32>
    %22 = math.exp %21 : vector<2x8x8xf32>
    %cst_17 = arith.constant dense<0.000000e+00> : vector<2x8xf32>
    %23 = vector.multi_reduction <add>, %22, %cst_17 [2] : vector<2x8x8xf32> to vector<2x8xf32>
    %24 = vector.shape_cast %23 : vector<2x8xf32> to vector<2x8x1xf32>
    %25 = tpu.reciprocal %24 {approx = true} : vector<2x8x1xf32> -> vector<2x8x1xf32>
    %26 = vector.broadcast %25 : vector<2x8x1xf32> to vector<2x8x8xf32>
    %27 = arith.mulf %22, %26 : vector<2x8x8xf32>
    %c0_18 = arith.constant 0 : index
    %c0_19 = arith.constant 0 : index
    %c0_20 = arith.constant 0 : index
    %c0_21 = arith.constant 0 : index
    %28 = vector.load %arg7[%c0_18, %c0_19, %c0_20, %c0_21] : memref<1x2x8x8xf32, #tpu.memory_space<vmem>>, vector<1x2x8x8xf32>
    %29 = vector.shape_cast %28 : vector<1x2x8x8xf32> to vector<2x8x8xf32>
    %30 = vector.shape_cast %27 : vector<2x8x8xf32> to vector<1x2x8x8xf32>
    tpu.vector_store %arg7[%c0_18, %c0_19, %c0_20, %c0_21], %30 {strides = array<i32>} : memref<1x2x8x8xf32, #tpu.memory_space<vmem>>, vector<1x2x8x8xf32>,
    "tpu.trace_start"() <{level = 10 : i32, message = "hqk,hkd->hqd"}> : () -> ()
    %cst_22 = arith.constant dense<0.000000e+00> : vector<2x8x32xf32>
    %31 = tpu.matmul %27, %5, %cst_22 {dimension_numbers = #tpu.dot_dimension_numbers<[2], [1], [1], [2], [0, 0, 0, 1, 1, 2], [0], [0]>} : vector<2x8x8xf32>, vector<2x8x32xf32>, vector<2x8x32xf32> -> vector<2x8x32xf32>
    "tpu.trace_stop"() : () -> ()
    %c0_23 = arith.constant 0 : index
    %c0_24 = arith.constant 0 : index
    %c0_25 = arith.constant 0 : index
    %c0_26 = arith.constant 0 : index
    %32 = vector.load %arg6[%c0_23, %c0_24, %c0_25, %c0_26] : memref<1x2x8x32xf32, #tpu.memory_space<vmem>>, vector<1x2x8x32xf32>
    %33 = vector.shape_cast %32 : vector<1x2x8x32xf32> to vector<2x8x32xf32>
    %34 = vector.shape_cast %31 : vector<2x8x32xf32> to vector<1x2x8x32xf32>
    tpu.vector_store %arg6[%c0_23, %c0_24, %c0_25, %c0_26], %34 {strides = array<i32>} : memref<1x2x8x32xf32, #tpu.memory_space<vmem>>, vector<1x2x8x32xf32>,
    return
  }
  func.func @transform_0(%arg0: i32, %arg1: i32) -> (i32, i32, i32, i32) {
    %c0_i32 = arith.constant 0 : i32
    %c0_i32_0 = arith.constant 0 : i32
    %c0_i32_1 = arith.constant 0 : i32
    return %arg0, %c0_i32, %arg1, %c0_i32_0 : i32, i32, i32, i32
  }
  func.func @transform_1(%arg0: i32, %arg1: i32) -> (i32, i32, i32, i32) {
    %c0_i32 = arith.constant 0 : i32
    %c0_i32_0 = arith.constant 0 : i32
    %c0_i32_1 = arith.constant 0 : i32
    %c0_i32_2 = arith.constant 0 : i32
    return %arg0, %c0_i32, %c0_i32_0, %c0_i32_1 : i32, i32, i32, i32
  }
  func.func @transform_2(%arg0: i32, %arg1: i32) -> (i32, i32, i32, i32) {
    %c0_i32 = arith.constant 0 : i32
    %c0_i32_0 = arith.constant 0 : i32
    %c0_i32_1 = arith.constant 0 : i32
    %c0_i32_2 = arith.constant 0 : i32
    return %arg0, %c0_i32, %c0_i32_0, %c0_i32_1 : i32, i32, i32, i32
  }
  func.func @transform_3(%arg0: i32, %arg1: i32) -> (i32, i32, i32) {
    %c0_i32 = arith.constant 0 : i32
    %c0_i32_0 = arith.constant 0 : i32
    return %arg0, %arg1, %c0_i32 : i32, i32, i32
  }
  func.func @transform_4(%arg0: i32, %arg1: i32) -> (i32, i32, i32, i32) {
    %c0_i32 = arith.constant 0 : i32
    %c0_i32_0 = arith.constant 0 : i32
    %c0_i32_1 = arith.constant 0 : i32
    return %arg0, %c0_i32, %arg1, %c0_i32_0 : i32, i32, i32, i32
  }
  func.func @transform_5(%arg0: i32, %arg1: i32) -> (i32, i32, i32, i32) {
    %c0_i32 = arith.constant 0 : i32
    %c0_i32_0 = arith.constant 0 : i32
    %c0_i32_1 = arith.constant 0 : i32
    return %arg0, %c0_i32, %arg1, %c0_i32_0 : i32, i32, i32, i32
  }
}

</mosaic_0001>

<bundles_post_ra>
// kernel: tpu_custom_call.1
= control target key start
LH: loop header
LB: loop body
LE: loop exit
PB: predicated region body
PF: predicated region fallthrough
CT: control target
= control target key end

     0   :  { %s1405_s0 = inlined_call_operand.hbm [shape: f32[2,2,8,32], index: 0, kind: input, shape index: {}]   ;;  %s1406_s1 = inlined_call_operand.hbm [shape: f32[2,2,8,32], index: 1, kind: input, shape index: {}]   ;;  %s1407_s2 = inlined_call_operand.hbm [shape: f32[2,2,8,32], index: 2, kind: input, shape index: {}]   ;;  %s1408_s3 = inlined_call_operand.hbm [shape: s8[2,8,8], index: 3, kind: input, shape index: {}]   ;;  %s1409_s4 = inlined_call_operand.hbm [shape: f32[2,2,8,32], index: 4, kind: output, shape index: {0}]   ;;  %s1410_s5 = inlined_call_operand.hbm [shape: f32[2,2,8,8], index: 5, kind: output, shape index: {1}]  }
   0x1   :  { %1418 = sst [smem:[#allocation24_spill]] %s1405_s0 }
   0x2   :  { %1419 = sst [smem:[#allocation25_spill]] %s1406_s1 }
   0x3   :  { %1420 = sst [smem:[#allocation26_spill]] %s1409_s4 }
   0x4   :  { %11 = vsyncpa [#allocation3], 0 }
   0x5   :  { %13 = vsyncpa [#allocation3 + $0x1], 0 }
   0x6   :  { %14 = vsyncpa [#allocation6], 0 }
   0x7   :  { %16 = vsyncpa [#allocation6 + $0x1], 0 }
   0x8   :  { %17 = vsyncpa [#allocation9], 0 }
   0x9   :  { %19 = vsyncpa [#allocation9 + $0x1], 0 }
   0xa   :  { %20 = vsyncpa [#allocation4], 0 }
   0xb   :  { %22 = vsyncpa [#allocation4 + $0x1], 0 }
   0xc   :  { %23 = vsyncpa [#allocation12], 0 }
   0xd   :  { %25 = vsyncpa [#allocation12 + $0x1], 0  ;;  %s1185_s18 = smov 0   ;;  %s1187_s19 = smov 0  }
   0xe   :  { %s1189_s20 = smov 0   ;;  %s1191_s21 = smov 0  }
   0xf   :  { %s1193_s22 = smov 0   ;;  %s1195_s23 = smov 0  }
  0x10 LB: > { %1421 = sst [smem:[#allocation18_spill]] %s1128_s18  ;;  %s1216_s24 = sadd.s32 4294967295, %s1148_s23   ;;  %s1148_s23 = sphi %s1195_s23, %s31_s23   ;;  %s1144_s22 = sphi %s1193_s22, %s1445_s22   ;;  %s1140_s21 = sphi %s1191_s21, %s1444_s21   ;;  %s1136_s20 = sphi %s1189_s20, %s1440_s20   ;;  %s1132_s19 = sphi %s1187_s19, %s1443_s19   ;;  %s1128_s18 = sphi %s1185_s18, %s1442_s18  }
  0x11   : > { %1422 = sst [smem:[#allocation19_spill]] %s1136_s20  ;;  %s771_s25 = sadd.s32 4294967294, %s1148_s23  }
  0x12   : > { %1423 = sst [smem:[#allocation20_spill]] %s1148_s23  ;;  %s43_s26 = sadd.s32 1, %s1144_s22 }
  0x13   : > { %s52_s27 = sadd.s32 1, %s1136_s20  ;;  %p45_p0 = scmp.ge.s32.totalorder %s43_s26, 2 }
  0x14   : > { %p59_p1 = scmp.ne.s32.totalorder %s1136_s20, %s1132_s19  ;;  %p60_p2 = scmp.eq.s32.totalorder %s1148_s23, 0 }
  0x15   : > { %p65_p3 = scmp.ne.s32.totalorder %s1132_s19, %s1128_s18  ;;  %s1447_s26 = smov (%p45_p0, %s43_s26), 0 }
  0x16   : > { %1424 = sst [smem:[#allocation21_spill]] %s1447_s26  ;;  %p1228_p4 = por %p60_p2, %p59_p1 }
  0x17   : > { %p66_p5 = scmp.eq.s32.totalorder %s1216_s24, 0  ;;  %s47_s29 = ssub.s32 %s1144_s22, %s1447_s26 }
  0x18   : > { %p171_p6 = scmp.eq.s32.totalorder %s1216_s24, 1  ;;  %p50_p7 = scmp.eq.s32.totalorder %s47_s29, 0 }
  0x19   : > { %p1236_p8 = por %p66_p5, %p65_p3  ;;  %p177_p10 = scmp.eq.s32.totalorder %s771_s25, 1 }
  0x1a   : > { %p1240_p9 = por %p171_p6, %p59_p1  ;;  %p773_p12 = scmp.ge.s32.totalorder %s1148_s23, 2 }
  0x1b   : > { %s1245_s7 = scalar_select %p50_p7, %s1136_s20, %s52_s27  }
  0x1c   : > { %p1247_p11 = por %p177_p10, %p65_p3  ;;  %p843_p13 = scmp.lt.s32.totalorder %s1148_s23, 2 }
  0x1d   : > { %1428 = sst [smem:[#allocation22_spill]] %s1245_s7  ;;  %s1254_s9 = sand.u32 1, %s1136_s20  }
  0x1e   : > { %s1429_s8 = scalar_select %p1247_p11, 1, 0 }
  0x1f   : > { %s1257_s10 = sshll.u32 %s1254_s9, 4  ;;  %s806_s11 = sshll.u32 %s1144_s22, 4 }
  0x20   : > { %1430 = sst [smem:[#allocation23_spill]] %s1429_s8  ;;  %p1262_p0 = pnand %p843_p13, %p1228_p4 }
  0x21   : > { %s248_s13 = sand.u32 1, %s1148_s23   ;;  %s1432_s1 = sld [smem:[#allocation25_spill]] }
  0x22   : > { %s252_s25 = scalar_lea.vmem [#allocation5], %s1257_s10  ;;  %s249_s29 = scalar_lea.sflag [#allocation6], %s248_s13 }
  0x23   : > { %s260_s27 = sshll.u32 %s252_s25, 4  ;;  %s1150_s28 = smov 128   ;;  %s261_s27 = int_to_ptr.vmem [resolvable:$true] %s260_s27 }
  0x24   : > { %s1151_s26 = smov 8   ;;  %p785_p1 = scmp.ge.s32.totalorder %s1148_s23, 1 }
  0x25   : > { %p310_p2 = scmp.lt.s32.totalorder %s1148_s23, 3  ;;  %s1434_s0 = sld [smem:[#allocation24_spill]] }
  0x26   : > { %s229_s13 = scalar_lea.vmem [#allocation2], %s1257_s10  ;;  %s226_s20 = scalar_lea.sflag [#allocation3], %s1254_s9 }
  0x27   : > { %s257_s16 = scalar_lea.hbm %s1432_s1, %s806_s11  ;;  %p1275_p3 = pnand %p785_p1, %p310_p2 }
  0x28   : > { %s258_s17 = sshll.u32 %s257_s16, 4  ;;  %s238_s7 = sshll.u32 %s229_s13, 4  ;;  %s259_s17 = int_to_ptr.hbm [resolvable:$true] %s258_s17  ;;  %s239_s7 = int_to_ptr.vmem [resolvable:$true] %s238_s7 }
  0x29   : > { %829 = dma.hbm_to_vmem [thread:$0]  (!%p1262_p0), %s259_s17, 256, %s261_s27, %s249_s29, %s1150_s28, %s1150_s28, %s1151_s26  }
  0x2a   : > { %s279_s23 = scalar_lea.hbm %s1407_s2, %s806_s11  ;;  %s274_s18 = scalar_lea.vmem [#allocation7], %s1257_s10 }
  0x2b   : > { %s235_s25 = scalar_lea.hbm %s1434_s0, %s806_s11  ;;  %s280_s8 = sshll.u32 %s279_s23, 4  ;;  %s281_s8 = int_to_ptr.hbm [resolvable:$true] %s280_s8 }
  0x2c   : > { %s236_s1 = sshll.u32 %s235_s25, 4  ;;  %s282_s15 = sshll.u32 %s274_s18, 4  ;;  %s237_s1 = int_to_ptr.hbm [resolvable:$true] %s236_s1  ;;  %s283_s15 = int_to_ptr.vmem [resolvable:$true] %s282_s15 }
  0x2d   : > { %826 = dma.hbm_to_vmem [thread:$0]  (!%p1262_p0), %s237_s1, 256, %s239_s7, %s226_s20, %s1150_s28, %s1150_s28, %s1151_s26  }
  0x2e   : > { %832 = dma.hbm_to_vmem [thread:$0]  (!%p1262_p0), %s281_s8, 256, %s283_s15, %s249_s29, %s1150_s28, %s1150_s28, %s1151_s26  }
  0x2f   : > { %s783_s16 = sshll.u32 %s1254_s9, 1  ;;  %s784_s25 = sshll.u32 %s1144_s22, 1 }
  0x30   : > { %s301_s4 = scalar_lea.hbm %s1408_s3, %s784_s25  ;;  %s296_s1 = scalar_lea.vmem [#allocation8], %s783_s16 }
  0x31   : > { %s305_s20 = sshll.u32 %s296_s1, 4  ;;  %s303_s7 = sshll.u32 %s301_s4, 4  ;;  %s306_s20 = int_to_ptr.vmem [resolvable:$true] %s305_s20  ;;  %s304_s7 = int_to_ptr.hbm [resolvable:$true] %s303_s7 }
  0x32   : > { %s293_s11 = scalar_lea.sflag [#allocation9], %s1254_s9  ;;  %314 = sbr.rel (%p1275_p3) target bundleno = 592 (0x250), region = 36 }
  0x33   : > { %835 = dma.hbm_to_vmem [thread:$0]  (!%p1262_p0), %s304_s7, 32, %s306_s20, %s293_s11  }
  0x34   : > { %s1303_s18 = sand.u32 (!%p1275_p3), 1, %s1132_s19  }
  0x35   : > { %s1306_s23 = sshll.u32 (!%p1275_p3), %s1303_s18, 4  ;;  %s317_s0 = scalar_lea.sflag (!%p1275_p3), [#allocation3], %s1303_s18 }
  0x36   : > { %s320_s26 = scalar_lea.vmem (!%p1275_p3), [#allocation2], %s1306_s23 }
  0x37   : > { %1107 = dma.done.wait (%p1236_p8), %s317_s0, 256  }
  0x38   : > { %1109 = vsyncadd (%p1236_p8), %s317_s0, 4294967040  ;;  %s326_s4 = sand.u32 1, %s1216_s24   ;;  %s330_s9 = scalar_lea.vmem [#allocation5], %s1306_s23 }
  0x39   : > { %s327_s8 = scalar_lea.sflag [#allocation6], %s326_s4 }
  0x3a   : > { %1111 = dma.done.wait (%p1236_p8), %s327_s8, 512  }
  0x3b   : > { %1113 = vsyncadd (%p1236_p8), %s327_s8, 4294966784  ;;  %s789_s10 = sshll.u32 %s1303_s18, 1  ;;  %s340_s12 = scalar_lea.vmem [#allocation7], %s1306_s23 }
  0x3c   : > { %s347_s29 = scalar_lea.sflag [#allocation9], %s1303_s18  ;;  %s350_s28 = scalar_lea.vmem [#allocation8], %s789_s10 }
  0x3d   : > { %1115 = dma.done.wait (%p1236_p8), %s347_s29, 32  }
  0x3e   : > { %1117 = vsyncadd (%p1236_p8), %s347_s29, 4294967264  ;;  %vm406_vm0 = vcmask 261120   ;;  %v402_v0 = vld [vmem:[%s330_s9] sm:$0xff]  ;;  %v403_v1 = vld [vmem:[%s330_s9 + $0x8] sm:$0xff]  ;;  %v1152_v5 = vmov 0   ;;  %vm470_vm3 = vcmask 64512  }
  0x3f   : > { %792 = vmatpush.xpose.msk.msra.mxu0 %vm406_vm0, %v402_v0  ;;  %v400_v2 = vld [vmem:[%s320_s26] sm:$0xff]  ;;  %794 = vmatpush.xpose.msk.msra.mxu1 %vm406_vm0, %v403_v1  ;;  %v401_v3 = vld [vmem:[%s320_s26 + $0x8] sm:$0xff]  ;;  %s397_s24 = scalar_lea.vmem [#allocation11], %s1306_s23  ;;  %s809_s30 = sshll.u32 %s1140_s21, 4 }
  0x40   : > { %v461_v4 = vld [vmem:[%s350_s28] sm:$0x3]  ;;  %v405_v27 = vld [vmem:[%s340_s12 + $0x8] sm:$0xff]  ;;  %s580_s14 = sshll.u32 %s397_s24, 4  ;;  %s579_s15 = scalar_lea.hbm %s1410_s5, %s809_s30  ;;  %s581_s14 = int_to_ptr.vmem [resolvable:$true] %s580_s14 }
  0x41   : > { %vm462_vm1 = vnez %v461_v4  ;;  %v404_v26 = vld [vmem:[%s340_s12] sm:$0xff]  ;;  %536 = vmatpush.msra.mxu3 %v405_v27  ;;  %s582_s16 = sshll.u32 %s579_s15, 4  ;;  %s549_s25 = scalar_lea.sflag [#allocation12], %s1303_s18  ;;  %s583_s16 = int_to_ptr.hbm [resolvable:$true] %s582_s16 }
  0x42   : > { %793 = vmatmul.msk.f32.vlgmr.msra.gmra.mxu0 %vm406_vm0, %v400_v2  ;;  %795 = vmatmul.msk.f32.vlgmr.msra.gmra.mxu1 %vm406_vm0, %v401_v3  ;;  %v463_v6 = vsel %vm462_vm1, 16843009, %v1152_v5  ;;  %s1040_s13 = sshra.s32 %s583_s16, 4  ;;  %s1046_s21 = scalar_lea.hbm %s1410_s5, 32  ;;  %s1041_s13 = int_to_ptr.hbm [resolvable:$true] %s1040_s13 }
  0x43   : > { %v464_v7 = vunpack.c.0.s8 %v463_v6  ;;  %513 = vmatpush.msra.mxu2 %v404_v26  ;;  %s1042_s1 = scalar_lea.hbm %s1041_s13, 16  ;;  %p1047_p7 = scmp.lt.s32.totalorder %s1041_s13, %s1410_s5 }
  0x44   : > { %p1043_p4 = scmp.ne.s32.totalorder %s1041_s13, %s1042_s1  ;;  %p1048_p8 = scmp.lt.s32.totalorder %s1046_s21, %s1042_s1 }
  0x45   : > { %vm465_vm2 = vcmp.ne.s32.totalorder %v464_v7, 0 }
  0x46   : > { %p1044_p5 = pnand %p1043_p4, %p1240_p9  ;;  %p1049_p10 = por %p1048_p8, %p1047_p7 }
  0x48   : > { %p1045_p6 = pneg %p1044_p5 }
  0x4a   : > { %p1050_p13 = pnand %p1049_p10, %p1045_p6 }
  0xbf   : > { %v430_v8 = vpop.f32.mrf.mxu0  ;;  %v456_v9 = vpop.f32.mrf.mxu1 }
  0xc0   : > { %v459_v10 = vmul.f32 0.17677669, %v430_v8  ;;  %v460_v12 = vmul.f32 0.17677669, %v456_v9 }
  0xc2   : > { %v468_v11 = vsel %vm465_vm2, -1e+09, %v459_v10  ;;  %v469_v14 = vsel %vm465_vm2, -1e+09, %v460_v12 }
  0xc3   : > { %v471_v13 = vsel %vm470_vm3, %v468_v11, -inf  ;;  %v474_v15 = vsel %vm470_vm3, %v469_v14, -inf }
  0xc4   : > { %472 = vmax.xlane.f32.xlu0 %v471_v13 }
  0xcc   : > { %475 = vmax.xlane.f32.xlu0 %v474_v15 }
 0x137   : > { %v473_v16 = vpop.xlane.xlu0 %472 }
 0x138   : > { %v477_v17 = vsub.f32 %v468_v11, %v473_v16 }
 0x13a   : > { %v479_v18 = vmul.f32 1.442695, %v477_v17 }
 0x13c   : > { %898 = vpow2.f32 %v479_v18 }
 0x13f   : > { %v476_v19 = vpop.xlane.xlu0 %475 }
 0x140   : > { %v478_v20 = vsub.f32 %v469_v14, %v476_v19 }
 0x142   : > { %v899_v21 = vpop.eup %898  ;;  %v481_v22 = vmul.f32 1.442695, %v478_v20 }
 0x143   : > { %v483_v23 = vsel %vm470_vm3, %v899_v21, 0.0 }
 0x144   : > { %900 = vpow2.f32 %v481_v22  ;;  %484 = vadd.xlane.f32.xlu1 %v483_v23 }
 0x14a   : > { %v901_v24 = vpop.eup %900 }
 0x14b   : > { %v486_v25 = vsel %vm470_vm3, %v901_v24, 0.0 }
 0x14c   : > { %487 = vadd.xlane.f32.xlu1 %v486_v25 }
 0x1b7   : > { %v485_v28 = vpop.xlane.xlu1 %484 }
 0x1b8   : > { %902 = vrcp.f32 %v485_v28 }
 0x1be   : > { %v903_v29 = vpop.eup %902 }
 0x1bf   : > { %v488_v30 = vpop.xlane.xlu1 %487  ;;  %v491_v31 = vmul.f32 %v903_v29, %v899_v21 }
 0x1c0   : > { %904 = vrcp.f32 %v488_v30 }
 0x1c1   : > { %493 = vst.msk [vmem:[%s397_s24] sm:$0xff] %vm470_vm3, %v491_v31  ;;  %796 = vmatmul.msk.f32.vlgmr.msra.gmra.mxu2 %vm470_vm3, %v491_v31 }
 0x1c6   : > { %v905_v32 = vpop.eup %904 }
 0x1c7   : > { %v492_v33 = vmul.f32 %v905_v32, %v901_v24 }
 0x1c9   : > { %494 = vst.msk [vmem:[%s397_s24 + $0x8] sm:$0xff] %vm470_vm3, %v492_v33  ;;  %797 = vmatmul.msk.f32.vlgmr.msra.gmra.mxu3 %vm470_vm3, %v492_v33 }
 0x1ca   : > { %1053 = shalt.err (!%p1050_p13)
}
 0x1cb   : > { %s1153_s26 = smov 128   ;;  %s1154_s4 = smov 8  }
 0x1cc   : > { %820 = dma.vmem_to_hbm [thread:$0]  (%p1240_p9), %s581_s14, 256, %s583_s16, %s549_s25, %s1153_s26, %s1153_s26, %s1154_s4  }
 0x1cd   : > { %s390_s8 = scalar_lea.vmem [#allocation10], %s1306_s23  ;;  %s1435_s12 = sld [smem:[#allocation26_spill]] }
 0x1ce   : > { %s562_s28 = sshll.u32 %s390_s8, 4  ;;  %s544_s17 = scalar_lea.sflag [#allocation4], %s1303_s18  ;;  %s563_s28 = int_to_ptr.vmem [resolvable:$true] %s562_s28 }
 0x1d3   : > { %s561_s29 = scalar_lea.hbm %s1435_s12, %s809_s30  ;;  %s1074_s16 = scalar_lea.hbm %s1435_s12, 32 }
 0x1d4   : > { %s564_s24 = sshll.u32 %s561_s29, 4  ;;  %s565_s24 = int_to_ptr.hbm [resolvable:$true] %s564_s24 }
 0x1d5   : > { %s1068_s27 = sshra.s32 %s565_s24, 4  ;;  %s1069_s27 = int_to_ptr.hbm [resolvable:$true] %s1068_s27 }
 0x1d6   : > { %s1070_s14 = scalar_lea.hbm %s1069_s27, 16  ;;  %p1075_p3 = scmp.lt.s32.totalorder %s1069_s27, %s1435_s12 }
 0x1d7   : > { %p1071_p0 = scmp.ne.s32.totalorder %s1069_s27, %s1070_s14  ;;  %p1076_p4 = scmp.lt.s32.totalorder %s1074_s16, %s1070_s14 }
 0x1d9   : > { %p1072_p1 = pnand %p1071_p0, %p1240_p9  ;;  %p1077_p5 = por %p1076_p4, %p1075_p3 }
 0x1db   : > { %p1073_p2 = pneg %p1072_p1 }
 0x1dd   : > { %p1078_p6 = pnand %p1077_p5, %p1073_p2 }
 0x244   : > { %v515_v34 = vpop.f32.mrf.mxu2 }
 0x245   : > { %541 = vst.msk [vmem:[%s390_s8] sm:$0xff] %vm406_vm0, %v515_v34 }
 0x24c   : > { %v538_v35 = vpop.f32.mrf.mxu3 }
 0x24d   : > { %542 = vst.msk [vmem:[%s390_s8 + $0x8] sm:$0xff] %vm406_vm0, %v538_v35 }
 0x24e   : > { %1081 = shalt.err (!%p1078_p6)
}
 0x24f   : > { %819 = dma.vmem_to_hbm [thread:$0]  (%p1240_p9), %s563_s28, 256, %s565_s24, %s544_s17, %s1153_s26, %s1153_s26, %s1154_s4  }
 0x250 PF: > { %s1436_s18 = sld [smem:[#allocation18_spill]]  ;;  %p837_p7 = pnand %p773_p12, %p1247_p11 }
 0x251   : > { %s1438_s1 = sld [smem:[#allocation20_spill]] }
 0x252   : > { %p838_p8 = pneg %p837_p7 }
 0x256   : > { %s597_s20 = sand.u32 1, %s1436_s18  }
 0x257   : > { %s598_s7 = scalar_lea.sflag [#allocation4], %s597_s20 }
 0x258   : > { %1119 = dma.done.wait (%p838_p8), %s598_s7, 256  }
 0x259   : > { %1121 = vsyncadd (%p838_p8), %s598_s7, 4294967040  ;;  %s608_s21 = scalar_lea.sflag [#allocation12], %s597_s20 }
 0x25a   : > { %1123 = dma.done.wait (%p838_p8), %s608_s21, 256  }
 0x25b   : > { %1125 = vsyncadd (%p838_p8), %s608_s21, 4294967040  ;;  %s31_s23 = sadd.s32 1, %s1438_s1   ;;  %s1439_s6 = sld [smem:[#allocation19_spill]] }
 0x25c   : > { %p28_p10 = scmp.ge.s32.totalorder %s31_s23, 4   ;;  %s1440_s20 = sld [smem:[#allocation22_spill]] }
 0x25d   : > { %s1441_s11 = sld [smem:[#allocation21_spill]]  ;;  %s1442_s18 = smov %s1132_s19 }
 0x25e   : > { %s1444_s21 = smov %s1144_s22 }
 0x25f   :  { %30 = sbr.rel (!%p28_p10) target bundleno = 16 (0x10), region = 135 }
 0x261   : > { %s1443_s19 = smov %s1439_s6 }
 0x263   : > { %s1445_s22 = smov %s1441_s11 }
 0x264   :  { %614 = vsyncpa [#allocation3], 1 }
 0x265   :  { %616 = vsyncpa [#allocation3 + $0x1], 1 }
 0x266   :  { %617 = vsyncpa [#allocation6], 1 }
 0x267   :  { %619 = vsyncpa [#allocation6 + $0x1], 1 }
 0x268   :  { %620 = vsyncpa [#allocation9], 1 }
 0x269   :  { %622 = vsyncpa [#allocation9 + $0x1], 1 }
 0x26a   :  { %623 = vsyncpa [#allocation4], 1 }
 0x26b   :  { %625 = vsyncpa [#allocation4 + $0x1], 1 }
 0x26c   :  { %626 = vsyncpa [#allocation12], 1 }
 0x26d   :  { %628 = vsyncpa [#allocation12 + $0x1], 1 }

</bundles_post_ra>
